<compile_context>
chip_gen: v5e
topology: v5e:2x2
jax: 0.10.0
libtpu: 0.0.40
codegen_flags: <defaults>
</compile_context>

<pallas_src>
import functools
import math

import jax
import jax.numpy as jnp
from jax import lax
from jax.experimental import pallas as pl
from jax.experimental.pallas import tpu as pltpu


def _round_up(x, m):
    return ((x + m - 1) // m) * m


def _resstack_kernel(x_ref, wt_ref, p_ref, o_ref, *, n_layers: int, eps: float):
    """Applies the shared Linear_ResBlock `n_layers` times on one row-tile."""
    tm, d = x_ref.shape
    mm_dtype = wt_ref.dtype                      # native dtype matmul (bf16 or f32)

    x = x_ref[...].astype(jnp.float32)           # (tm, d) residual carry in f32
    wt = wt_ref[...]                             # (d, d) == W.T, keep native dtype

    # Hoist f32 casts + (1,d)->(tm,d) broadcasts out of the unrolled layer loop
    # (JAX does not CSE broadcast_in_dim; per-layer re-broadcast is pure filler).
    b = jnp.broadcast_to(p_ref[0:1, :].astype(jnp.float32), (tm, d))
    g = jnp.broadcast_to(p_ref[1:2, :].astype(jnp.float32), (tm, d))
    beta = jnp.broadcast_to(p_ref[2:3, :].astype(jnp.float32), (tm, d))

    inv_d = jnp.float32(1.0 / d)
    eps_f = jnp.float32(eps)

    def body(_, xc):
        # Linear: y = x @ W.T + b    (MXU in native dtype, f32 accumulate)
        y = jnp.dot(xc.astype(mm_dtype), wt,
                    preferred_element_type=jnp.float32) + b
        # LayerNorm over last dim (biased variance, eps inside sqrt), affine.
        # Two *independent* reductions -> XLU can pipeline them back-to-back.
        s1 = jnp.sum(y, axis=-1, keepdims=True)
        s2 = jnp.sum(y * y, axis=-1, keepdims=True)
        mean = s1 * inv_d
        var = jnp.maximum(s2 * inv_d - mean * mean, 0.0)   # guard cancellation
        yn = (y - mean) * lax.rsqrt(var + eps_f)
        # Affine + ReLU + residual add.
        res = jnp.maximum(yn * g + beta, 0.0)
        return xc + res

    # Fully unroll short stacks (LLO scheduler visibility); keep a rolled loop
    # for deep stacks to bound vreg live ranges.
    out = lax.fori_loop(0, n_layers, body, x, unroll=(n_layers <= 8))
    o_ref[...] = out.astype(o_ref.dtype)


def residual_stack(x, w, b, gamma, beta, *, n_res_layers: int,
                   eps: float = 1e-5, tm: int = 256):
    """x: (..., D); w: (D, D) PyTorch Linear weight; b/gamma/beta: (D,)."""
    orig_shape = x.shape
    d = orig_shape[-1]
    rows = int(math.prod(orig_shape[:-1])) if len(orig_shape) > 1 else 1
    x2 = x.reshape(rows, d)

    # ---- tile-size selection -------------------------------------------------
    # Big row tiles amortize the ~0.35us/step pipeline overhead and give the MXU
    # a full M dimension, but:
    #   (a) keep >=2 grid steps when possible so v7x's two TensorCores both get
    #       work on the "parallel" axis;
    #   (b) keep the double-buffered working set inside the most conservative
    #       scoped-VMEM budget (v7x 64 MiB phys / 32 MiB default, v5e 16 MiB
    #       default) so one tm works on every generation.
    tm = max(8, min(int(tm), _round_up(max(1, -(-rows // 2)), 8)))

    itemsize = jnp.dtype(x.dtype).itemsize
    w_itemsize = jnp.dtype(w.dtype).itemsize
    vmem_budget = 12 * 1024 * 1024

    def footprint(t):
        io = 2 * 2 * t * d * itemsize            # x-in + out tiles, double-buffered
        wgt = 2 * d * d * w_itemsize             # resident W.T (double-buffered)
        prm = 2 * 8 * _round_up(d, 128) * 4      # (3,d) params tile, padded
        return io + wgt + prm

    while tm > 8 and footprint(tm) > vmem_budget:
        tm //= 2
    tm = max(8, (tm // 8) * 8)                   # sublane-aligned

    pad_rows = (-rows) % tm
    if pad_rows:
        x2 = jnp.concatenate([x2, jnp.zeros((pad_rows, d), x2.dtype)], axis=0)
    total_rows = x2.shape[0]

    wt = w.T                                     # pre-transpose: kernel does x @ W.T
    # Single (3, D) parameter operand: row 0 = bias, 1 = gamma, 2 = beta.
    params = jnp.stack([b, gamma, beta], axis=0).astype(jnp.float32)

    grid = (total_rows // tm,)
    kernel = functools.partial(_resstack_kernel, n_layers=n_res_layers, eps=eps)

    cost = pl.CostEstimate(
        flops=2 * n_res_layers * total_rows * d * d,
        transcendentals=n_res_layers * total_rows,           # one rsqrt / row / layer
        bytes_accessed=(2 * total_rows * d * itemsize        # x in + out
                        + d * d * w_itemsize                 # W.T
                        + 3 * d * 4),                        # params
    )

    out = pl.pallas_call(
        kernel,
        out_shape=jax.ShapeDtypeStruct((total_rows, d), x2.dtype),
        grid_spec=pltpu.PrefetchScalarGridSpec(
            num_scalar_prefetch=0,
            grid=grid,
            in_specs=[
                pl.BlockSpec((tm, d), lambda i: (i, 0)),     # x row-tile
                pl.BlockSpec((d, d), lambda i: (0, 0)),      # W.T (resident)
                pl.BlockSpec((3, d), lambda i: (0, 0)),      # [bias; gamma; beta]
            ],
            out_specs=pl.BlockSpec((tm, d), lambda i: (i, 0)),
        ),
        compiler_params=pltpu.CompilerParams(
            dimension_semantics=("parallel",),
            vmem_limit_bytes=32 * 1024 * 1024,
        ),
        cost_estimate=cost,
    )(x2, wt, params)

    out = out[:rows]
    return out.reshape(orig_shape)


def _reference(x, w, b, gamma, beta, n_res_layers, eps=1e-5):
    """Pure-JAX reference mirroring the PyTorch module."""
    xf = x.astype(jnp.float32)
    for _ in range(n_res_layers):
        y = xf @ w.T.astype(jnp.float32) + b.astype(jnp.float32)
        mean = jnp.mean(y, axis=-1, keepdims=True)
        var = jnp.mean((y - mean) ** 2, axis=-1, keepdims=True)
        yn = (y - mean) / jnp.sqrt(var + eps)
        res = jnp.maximum(yn * gamma + beta, 0.0)
        xf = xf + res
    return xf.astype(x.dtype)


if __name__ == "__main__":
    # Small shapes implied by the module: x is (batch, seq, in_dim) with a
    # Linear over the last axis.
    batch, seq, in_dim = 2, 8, 32
    n_res_layers = 3

    key = jax.random.PRNGKey(0)
    kx, kw, kb, kg, kbt = jax.random.split(key, 5)

    x = jax.random.normal(kx, (batch, seq, in_dim), dtype=jnp.float32)

    # Deterministic parameter init (PyTorch-Linear-like uniform fan-in scaling,
    # LayerNorm gamma=1 + small perturbation, beta small).
    bound = 1.0 / (in_dim ** 0.5)
    w = jax.random.uniform(kw, (in_dim, in_dim), jnp.float32, -bound, bound)
    b = jax.random.uniform(kb, (in_dim,), jnp.float32, -bound, bound)
    gamma = 1.0 + 0.1 * jax.random.normal(kg, (in_dim,), jnp.float32)
    beta = 0.1 * jax.random.normal(kbt, (in_dim,), jnp.float32)

    out = residual_stack(x, w, b, gamma, beta, n_res_layers=n_res_layers)
    out = jax.block_until_ready(out)

    ref = _reference(x, w, b, gamma, beta, n_res_layers)
    assert out.shape == x.shape
    err = float(jnp.max(jnp.abs(out - ref)))
    assert err < 1e-4, f"max abs err {err}"

    print("KERNEL_OK")
</pallas_src>

<mosaic_0001>
module attributes {stable_mosaic.version = 11 : i64} {
  func.func @_resstack_kernel(%arg0: i32, %arg1: memref<8x32xf32, #tpu.memory_space<vmem>>, %arg2: memref<32x32xf32, #tpu.memory_space<vmem>>, %arg3: memref<3x32xf32, #tpu.memory_space<vmem>>, %arg4: memref<8x32xf32, #tpu.memory_space<vmem>>) attributes {dimension_semantics = [#tpu.dimension_semantics<parallel>], iteration_bounds = array<i64: 2>, scalar_prefetch = 0 : i64, scratch_operands = 0 : i64, tpu.core_type = #tpu.core_type<tc>, window_params = [{transform_indices = @transform_0, window_bounds = array<i64: 8, 32>}, {pipeline_mode = #tpu.pipeline_mode<synchronous>, transform_indices = @transform_1, window_bounds = array<i64: 32, 32>}, {pipeline_mode = #tpu.pipeline_mode<synchronous>, transform_indices = @transform_2, window_bounds = array<i64: 3, 32>}, {transform_indices = @transform_3, window_bounds = array<i64: 8, 32>}]} {
    %c0 = arith.constant 0 : index
    %c0_0 = arith.constant 0 : index
    %0 = vector.load %arg1[%c0, %c0_0] : memref<8x32xf32, #tpu.memory_space<vmem>>, vector<8x32xf32>
    %c0_1 = arith.constant 0 : index
    %c0_2 = arith.constant 0 : index
    %1 = vector.load %arg2[%c0_1, %c0_2] : memref<32x32xf32, #tpu.memory_space<vmem>>, vector<32x32xf32>
    %c0_3 = arith.constant 0 : index
    %c0_4 = arith.constant 0 : index
    %2 = vector.load %arg3[%c0_3, %c0_4] : memref<3x32xf32, #tpu.memory_space<vmem>>, vector<1x32xf32>
    %3 = vector.shape_cast %2 : vector<1x32xf32> to vector<1x32xf32>
    %4 = vector.broadcast %3 : vector<1x32xf32> to vector<8x32xf32>
    %c1 = arith.constant 1 : index
    %c0_5 = arith.constant 0 : index
    %5 = vector.load %arg3[%c1, %c0_5] : memref<3x32xf32, #tpu.memory_space<vmem>>, vector<1x32xf32>
    %6 = vector.shape_cast %5 : vector<1x32xf32> to vector<1x32xf32>
    %7 = vector.broadcast %6 : vector<1x32xf32> to vector<8x32xf32>
    %c2 = arith.constant 2 : index
    %c0_6 = arith.constant 0 : index
    %8 = vector.load %arg3[%c2, %c0_6] : memref<3x32xf32, #tpu.memory_space<vmem>>, vector<1x32xf32>
    %9 = vector.shape_cast %8 : vector<1x32xf32> to vector<1x32xf32>
    %10 = vector.broadcast %9 : vector<1x32xf32> to vector<8x32xf32>
    %cst = arith.constant 3.125000e-02 : f32
    %cst_7 = arith.constant 9.99999974E-6 : f32
    %c0_i32 = arith.constant 0 : i32
    %cst_8 = arith.constant dense<0.000000e+00> : vector<8x32xf32>
    %11 = tpu.matmul %0, %1, %cst_8 {dimension_numbers = #tpu.dot_dimension_numbers<[1], [0], [0], [1], [0, 0, 1, 1], [], []>} : vector<8x32xf32>, vector<32x32xf32>, vector<8x32xf32> -> vector<8x32xf32>
    %12 = arith.addf %11, %4 : vector<8x32xf32>
    %cst_9 = arith.constant dense<0.000000e+00> : vector<8xf32>
    %13 = vector.multi_reduction <add>, %12, %cst_9 [1] : vector<8x32xf32> to vector<8xf32>
    %14 = vector.shape_cast %13 : vector<8xf32> to vector<8x1xf32>
    %15 = arith.mulf %12, %12 : vector<8x32xf32>
    %cst_10 = arith.constant dense<0.000000e+00> : vector<8xf32>
    %16 = vector.multi_reduction <add>, %15, %cst_10 [1] : vector<8x32xf32> to vector<8xf32>
    %17 = vector.shape_cast %16 : vector<8xf32> to vector<8x1xf32>
    %18 = vector.broadcast %cst : f32 to vector<8x1xf32>
    %19 = arith.mulf %14, %18 : vector<8x1xf32>
    %20 = vector.broadcast %cst : f32 to vector<8x1xf32>
    %21 = arith.mulf %17, %20 : vector<8x1xf32>
    %22 = arith.mulf %19, %19 : vector<8x1xf32>
    %23 = arith.subf %21, %22 : vector<8x1xf32>
    %cst_11 = arith.constant 0.000000e+00 : f32
    %24 = vector.broadcast %cst_11 : f32 to vector<8x1xf32>
    %25 = arith.maximumf %23, %24 : vector<8x1xf32>
    %26 = vector.broadcast %19 : vector<8x1xf32> to vector<8x32xf32>
    %27 = arith.subf %12, %26 : vector<8x32xf32>
    %28 = vector.broadcast %cst_7 : f32 to vector<8x1xf32>
    %29 = arith.addf %25, %28 : vector<8x1xf32>
    %30 = math.rsqrt %29 : vector<8x1xf32>
    %31 = vector.broadcast %30 : vector<8x1xf32> to vector<8x32xf32>
    %32 = arith.mulf %27, %31 : vector<8x32xf32>
    %33 = arith.mulf %32, %7 : vector<8x32xf32>
    %34 = arith.addf %33, %10 : vector<8x32xf32>
    %cst_12 = arith.constant 0.000000e+00 : f32
    %35 = vector.broadcast %cst_12 : f32 to vector<8x32xf32>
    %36 = arith.maximumf %34, %35 : vector<8x32xf32>
    %37 = arith.addf %0, %36 : vector<8x32xf32>
    %c1_i32 = arith.constant 1 : i32
    %cst_13 = arith.constant dense<0.000000e+00> : vector<8x32xf32>
    %38 = tpu.matmul %37, %1, %cst_13 {dimension_numbers = #tpu.dot_dimension_numbers<[1], [0], [0], [1], [0, 0, 1, 1], [], []>} : vector<8x32xf32>, vector<32x32xf32>, vector<8x32xf32> -> vector<8x32xf32>
    %39 = arith.addf %38, %4 : vector<8x32xf32>
    %cst_14 = arith.constant dense<0.000000e+00> : vector<8xf32>
    %40 = vector.multi_reduction <add>, %39, %cst_14 [1] : vector<8x32xf32> to vector<8xf32>
    %41 = vector.shape_cast %40 : vector<8xf32> to vector<8x1xf32>
    %42 = arith.mulf %39, %39 : vector<8x32xf32>
    %cst_15 = arith.constant dense<0.000000e+00> : vector<8xf32>
    %43 = vector.multi_reduction <add>, %42, %cst_15 [1] : vector<8x32xf32> to vector<8xf32>
    %44 = vector.shape_cast %43 : vector<8xf32> to vector<8x1xf32>
    %45 = vector.broadcast %cst : f32 to vector<8x1xf32>
    %46 = arith.mulf %41, %45 : vector<8x1xf32>
    %47 = vector.broadcast %cst : f32 to vector<8x1xf32>
    %48 = arith.mulf %44, %47 : vector<8x1xf32>
    %49 = arith.mulf %46, %46 : vector<8x1xf32>
    %50 = arith.subf %48, %49 : vector<8x1xf32>
    %cst_16 = arith.constant 0.000000e+00 : f32
    %51 = vector.broadcast %cst_16 : f32 to vector<8x1xf32>
    %52 = arith.maximumf %50, %51 : vector<8x1xf32>
    %53 = vector.broadcast %46 : vector<8x1xf32> to vector<8x32xf32>
    %54 = arith.subf %39, %53 : vector<8x32xf32>
    %55 = vector.broadcast %cst_7 : f32 to vector<8x1xf32>
    %56 = arith.addf %52, %55 : vector<8x1xf32>
    %57 = math.rsqrt %56 : vector<8x1xf32>
    %58 = vector.broadcast %57 : vector<8x1xf32> to vector<8x32xf32>
    %59 = arith.mulf %54, %58 : vector<8x32xf32>
    %60 = arith.mulf %59, %7 : vector<8x32xf32>
    %61 = arith.addf %60, %10 : vector<8x32xf32>
    %cst_17 = arith.constant 0.000000e+00 : f32
    %62 = vector.broadcast %cst_17 : f32 to vector<8x32xf32>
    %63 = arith.maximumf %61, %62 : vector<8x32xf32>
    %64 = arith.addf %37, %63 : vector<8x32xf32>
    %c2_i32 = arith.constant 2 : i32
    %cst_18 = arith.constant dense<0.000000e+00> : vector<8x32xf32>
    %65 = tpu.matmul %64, %1, %cst_18 {dimension_numbers = #tpu.dot_dimension_numbers<[1], [0], [0], [1], [0, 0, 1, 1], [], []>} : vector<8x32xf32>, vector<32x32xf32>, vector<8x32xf32> -> vector<8x32xf32>
    %66 = arith.addf %65, %4 : vector<8x32xf32>
    %cst_19 = arith.constant dense<0.000000e+00> : vector<8xf32>
    %67 = vector.multi_reduction <add>, %66, %cst_19 [1] : vector<8x32xf32> to vector<8xf32>
    %68 = vector.shape_cast %67 : vector<8xf32> to vector<8x1xf32>
    %69 = arith.mulf %66, %66 : vector<8x32xf32>
    %cst_20 = arith.constant dense<0.000000e+00> : vector<8xf32>
    %70 = vector.multi_reduction <add>, %69, %cst_20 [1] : vector<8x32xf32> to vector<8xf32>
    %71 = vector.shape_cast %70 : vector<8xf32> to vector<8x1xf32>
    %72 = vector.broadcast %cst : f32 to vector<8x1xf32>
    %73 = arith.mulf %68, %72 : vector<8x1xf32>
    %74 = vector.broadcast %cst : f32 to vector<8x1xf32>
    %75 = arith.mulf %71, %74 : vector<8x1xf32>
    %76 = arith.mulf %73, %73 : vector<8x1xf32>
    %77 = arith.subf %75, %76 : vector<8x1xf32>
    %cst_21 = arith.constant 0.000000e+00 : f32
    %78 = vector.broadcast %cst_21 : f32 to vector<8x1xf32>
    %79 = arith.maximumf %77, %78 : vector<8x1xf32>
    %80 = vector.broadcast %73 : vector<8x1xf32> to vector<8x32xf32>
    %81 = arith.subf %66, %80 : vector<8x32xf32>
    %82 = vector.broadcast %cst_7 : f32 to vector<8x1xf32>
    %83 = arith.addf %79, %82 : vector<8x1xf32>
    %84 = math.rsqrt %83 : vector<8x1xf32>
    %85 = vector.broadcast %84 : vector<8x1xf32> to vector<8x32xf32>
    %86 = arith.mulf %81, %85 : vector<8x32xf32>
    %87 = arith.mulf %86, %7 : vector<8x32xf32>
    %88 = arith.addf %87, %10 : vector<8x32xf32>
    %cst_22 = arith.constant 0.000000e+00 : f32
    %89 = vector.broadcast %cst_22 : f32 to vector<8x32xf32>
    %90 = arith.maximumf %88, %89 : vector<8x32xf32>
    %91 = arith.addf %64, %90 : vector<8x32xf32>
    %c0_23 = arith.constant 0 : index
    %c0_24 = arith.constant 0 : index
    %92 = vector.load %arg4[%c0_23, %c0_24] : memref<8x32xf32, #tpu.memory_space<vmem>>, vector<8x32xf32>
    tpu.vector_store %arg4[%c0_23, %c0_24], %91 {strides = array<i32>} : memref<8x32xf32, #tpu.memory_space<vmem>>, vector<8x32xf32>,
    return
  }
  func.func @transform_0(%arg0: i32) -> (i32, i32) {
    %c0_i32 = arith.constant 0 : i32
    %c0_i32_0 = arith.constant 0 : i32
    return %arg0, %c0_i32 : i32, i32
  }
  func.func @transform_1(%arg0: i32) -> (i32, i32) {
    %c0_i32 = arith.constant 0 : i32
    %c0_i32_0 = arith.constant 0 : i32
    %c0_i32_1 = arith.constant 0 : i32
    return %c0_i32, %c0_i32_0 : i32, i32
  }
  func.func @transform_2(%arg0: i32) -> (i32, i32) {
    %c0_i32 = arith.constant 0 : i32
    %c0_i32_0 = arith.constant 0 : i32
    %c0_i32_1 = arith.constant 0 : i32
    return %c0_i32, %c0_i32_0 : i32, i32
  }
  func.func @transform_3(%arg0: i32) -> (i32, i32) {
    %c0_i32 = arith.constant 0 : i32
    %c0_i32_0 = arith.constant 0 : i32
    return %arg0, %c0_i32 : i32, i32
  }
}

</mosaic_0001>

<bundles_post_ra>
// kernel: tpu_custom_call.1
= control target key start
LH: loop header
LB: loop body
LE: loop exit
PB: predicated region body
PF: predicated region fallthrough
CT: control target
= control target key end

     0   :  { %8 = vsyncpa [#allocation3], 0  ;;  %s950_s0 = inlined_call_operand.hbm [shape: f32[16,32], index: 0, kind: input, shape index: {}]   ;;  %s951_s1 = inlined_call_operand.hbm [shape: f32[32,32], index: 1, kind: input, shape index: {}]   ;;  %s952_s2 = inlined_call_operand.hbm [shape: f32[3,32], index: 2, kind: input, shape index: {}]   ;;  %s953_s3 = inlined_call_operand.hbm [shape: f32[16,32], index: 3, kind: output, shape index: {}]  }
   0x1   :  { %10 = vsyncpa [#allocation3 + $0x1], 0 }
   0x2   :  { %11 = vsyncpa [#allocation6], 0 }
   0x3   :  { %12 = vsyncpa [#allocation4], 0 }
   0x4   :  { %14 = vsyncpa [#allocation4 + $0x1], 0  ;;  %s776_s12 = smov 0   ;;  %s778_s13 = smov 0  }
   0x5   :  { %s780_s14 = smov 0   ;;  %s782_s15 = smov 0  }
   0x6 LB: > { %s130_s18 = sshll.u32 %s951_s1, 4  ;;  %s800_s19 = sadd.s32 4294967295, %s750_s15   ;;  %s750_s15 = sphi %s782_s15, %s964_s15   ;;  %s746_s14 = sphi %s780_s14, %s963_s14   ;;  %s742_s13 = sphi %s778_s13, %s962_s13   ;;  %s738_s12 = sphi %s776_s12, %s961_s12   ;;  %s131_s18 = int_to_ptr.hbm [resolvable:$true] %s130_s18 }
   0x7   : > { %p494_p0 = scmp.ge.s32.totalorder %s750_s15, 1  ;;  %p41_p1 = scmp.eq.s32.totalorder %s800_s19, 0 }
   0x8   : > { %p119_p2 = scmp.lt.s32.totalorder %s750_s15, 3  ;;  %s752_s21 = smov [#allocation5]  }
   0x9   : > { %s132_s22 = sshll.u32 %s752_s21, 4  ;;  %s145_s25 = sshll.u32 %s952_s2, 4  ;;  %s133_s22 = int_to_ptr.vmem [resolvable:$true] %s132_s22  ;;  %s146_s25 = int_to_ptr.hbm [resolvable:$true] %s145_s25 }
   0xa   : > { %p805_p3 = pnand %p494_p0, %p119_p2  ;;  %s753_s26 = smov [#allocation7]  }
   0xb   : > { %s147_s27 = sshll.u32 %s753_s26, 4  ;;  %s754_s28 = smov 128   ;;  %s148_s27 = int_to_ptr.vmem [resolvable:$true] %s147_s27 }
   0xc   : > { %p524_p4 = pneg %p805_p3  ;;  %s755_s29 = smov 8  }
   0xd   : > { %s493_s30 = sadd.s32 4294967294, %s750_s15   ;;  %s819_s4 = sadd.s32 1, %s750_s15  }
   0xe   : > { %p525_p6 = pnand %p524_p4, %p41_p1  ;;  %s24_s5 = ssub.s32 %s750_s15, %s819_s4 }
   0xf   : > { %s27_s6 = sadd.s32 1, %s746_s14  ;;  %p25_p7 = scmp.eq.s32.totalorder %s24_s5, 0 }
  0x10   : > { %527 = dma.hbm_to_vmem [thread:$0]  (!%p525_p6), %s131_s18, 512, %s133_s22, [#allocation6], %s754_s28, %s754_s28, %s755_s29  }
  0x11   : > { %530 = dma.hbm_to_vmem [thread:$0]  (!%p525_p6), %s146_s25, 64, %s148_s27, [#allocation6]  }
  0x12   : > { %p34_p8 = scmp.ne.s32.totalorder %s746_s14, %s742_s13  ;;  %p35_p9 = scmp.eq.s32.totalorder %s750_s15, 0 }
  0x13   : > { %p40_p10 = scmp.ne.s32.totalorder %s742_s13, %s738_s12  ;;  %p106_p13 = scmp.eq.s32.totalorder %s800_s19, 1 }
  0x14   : > { %s830_s7 = scalar_select %p25_p7, %s746_s14, %s27_s6  }
  0x15   : > { %p832_p11 = por %p35_p9, %p34_p8  ;;  %p838_p12 = por %p41_p1, %p40_p10 }
  0x16   : > { %p112_p0 = scmp.eq.s32.totalorder %s493_s30, 1  ;;  %p541_p2 = scmp.lt.s32.totalorder %s750_s15, 2 }
  0x17   : > { %s158_s10 = sand.u32 1, %s746_s14   ;;  %p845_p4 = por %p106_p13, %p34_p8 }
  0x18   : > { %p849_p6 = por %p112_p0, %p40_p10  ;;  %s498_s17 = sshll.u32 %s158_s10, 3 }
  0x19   : > { %s499_s18 = sshll.u32 %s750_s15, 3  ;;  %s162_s24 = scalar_lea.vmem [#allocation2], %s498_s17 }
  0x1a   : > { %s166_s23 = scalar_lea.hbm %s950_s0, %s499_s18  ;;  %s170_s25 = sshll.u32 %s162_s24, 4  ;;  %s171_s25 = int_to_ptr.vmem [resolvable:$true] %s170_s25 }
  0x1b   : > { %s168_s26 = sshll.u32 %s166_s23, 4  ;;  %p859_p7 = pnand %p541_p2, %p832_p11  ;;  %s169_s26 = int_to_ptr.hbm [resolvable:$true] %s168_s26 }
  0x1c   : > { %s159_s28 = scalar_lea.sflag [#allocation3], %s158_s10  ;;  %s650_s29 = sshra.s32 %s169_s26, 4  ;;  %s651_s29 = int_to_ptr.hbm [resolvable:$true] %s650_s29 }
  0x1d   : > { %s652_s30 = scalar_lea.hbm %s651_s29, 8  ;;  %p654_p9 = pneg %p859_p7 }
  0x1e   : > { %p653_p8 = scmp.ne.s32.totalorder %s651_s29, %s652_s30  ;;  %s657_s17 = scalar_lea.hbm %s950_s0, 16 }
  0x1f   : > { %p658_p11 = scmp.lt.s32.totalorder %s651_s29, %s950_s0  ;;  %p659_p0 = scmp.lt.s32.totalorder %s657_s17, %s652_s30 }
  0x20   : > { %p655_p10 = pnand %p654_p9, %p653_p8 }
  0x21   : > { %p660_p2 = por %p659_p0, %p658_p11 }
  0x22   : > { %p656_p13 = pneg %p655_p10 }
  0x24   : > { %p661_p5 = pnand %p660_p2, %p656_p13 }
  0x26   : > { %664 = shalt.err (!%p661_p5)
}
  0x27   : > { %534 = dma.hbm_to_vmem [thread:$0]  (!%p859_p7), %s169_s26, 128, %s171_s25, %s159_s28  }
  0x28   : > { %179 = sbr.rel (%p805_p3) target bundleno = 932 (0x3a4), region = 32  ;;  %s876_s10 = sand.u32 (!%p805_p3), 1, %s742_s13  }
  0x29   : > { %s501_s21 = sshll.u32 (!%p805_p3), %s876_s10, 3  ;;  %s182_s22 = scalar_lea.sflag (!%p805_p3), [#allocation3], %s876_s10 }
  0x2a   : > { %s185_s23 = scalar_lea.vmem (!%p805_p3), [#allocation2], %s501_s21 }
  0x2d   : > { %725 = dma.done.wait (%p838_p12), %s182_s22, 128  }
  0x2e   : > { %727 = vsyncadd (%p838_p12), %s182_s22, 4294967168 }
  0x2f   : > { %729 = dma.done.wait (%p41_p1), [#allocation6], 576  }
  0x30   : > { %731 = vsyncadd (%p41_p1), [#allocation6], 4294966720  ;;  %v223_v0 = vld [vmem:[#allocation5 + $0x18] sm:$0xff]  ;;  %v222_v1 = vld [vmem:[#allocation5 + $0x10] sm:$0xff]  ;;  %vm230_vm0 = vcmask 261120   ;;  %s509_s20 = sshll.u32 %s800_s19, 3 }
  0x31   : > { %246 = vmatpush.msra.mxu0 %v223_v0  ;;  %298 = vmatpush.msra.mxu1 %v223_v0  ;;  %v221_v2 = vld [vmem:[#allocation5 + $0x8] sm:$0xff]  ;;  %v220_v3 = vld [vmem:[#allocation5] sm:$0xff]  ;;  %v219_v4 = vld [vmem:[%s185_s23] sm:$0xff]  ;;  %s399_s25 = scalar_lea.hbm %s953_s3, %s509_s20  ;;  %s218_s26 = scalar_lea.vmem [#allocation8], %s501_s21 }
  0x32   : > { %350 = vmatpush.msra.mxu2 %v223_v0  ;;  %v891_v5 = vld [vmem:[#allocation7] ss:$0 sm:$0xff]  ;;  %v896_v26 = vld [vmem:[#allocation7 + $0x1] ss:$0 sm:$0xff]  ;;  %v898_v28 = vld [vmem:[#allocation7 + $0x2] ss:$0 sm:$0xff] }
  0x33   : > { %247 = vmatpush.msra.mxu0 %v222_v1  ;;  %299 = vmatpush.msra.mxu1 %v222_v1  ;;  %s401_s27 = sshll.u32 %s218_s26, 4  ;;  %s403_s28 = sshll.u32 %s399_s25, 4  ;;  %s402_s27 = int_to_ptr.vmem [resolvable:$true] %s401_s27  ;;  %s404_s28 = int_to_ptr.hbm [resolvable:$true] %s403_s28 }
  0x34   : > { %351 = vmatpush.msra.mxu2 %v222_v1  ;;  %s389_s19 = scalar_lea.sflag [#allocation4], %s876_s10  ;;  %s694_s29 = sshra.s32 %s404_s28, 4  ;;  %s695_s29 = int_to_ptr.hbm [resolvable:$true] %s694_s29 }
  0x35   : > { %248 = vmatpush.msra.mxu0 %v221_v2  ;;  %300 = vmatpush.msra.mxu1 %v221_v2  ;;  %s696_s30 = scalar_lea.hbm %s695_s29, 8  ;;  %s700_s17 = scalar_lea.hbm %s953_s3, 16 }
  0x36   : > { %352 = vmatpush.msra.mxu2 %v221_v2  ;;  %p697_p1 = scmp.ne.s32.totalorder %s695_s29, %s696_s30  ;;  %p701_p12 = scmp.lt.s32.totalorder %s695_s29, %s953_s3 }
  0x37   : > { %249 = vmatpush.msra.mxu0 %v220_v3  ;;  %301 = vmatpush.msra.mxu1 %v220_v3  ;;  %p702_p7 = scmp.lt.s32.totalorder %s700_s17, %s696_s30 }
  0x38   : > { %505 = vmatmul.msk.f32.vlgmr.msra.gmra.mxu0 %vm230_vm0, %v219_v4  ;;  %353 = vmatpush.msra.mxu2 %v220_v3  ;;  %p698_p3 = pnand %p697_p1, %p845_p4 }
  0x39   : > { %p703_p8 = por %p702_p7, %p701_p12 }
  0x3a   : > { %p699_p5 = pneg %p698_p3 }
  0x3c   : > { %p704_p9 = pnand %p703_p8, %p699_p5 }
  0xb5   : > { %v251_v6 = vpop.f32.mrf.mxu0 }
  0xb6   : > { %v252_v7 = vadd.f32 %v891_v5, %v251_v6 }
  0xb8   : > { %v254_v8 = vsel %vm230_vm0, %v252_v7, 0.0  ;;  %v257_v9 = vmul.f32 %v252_v7, %v252_v7 }
  0xb9   : > { %255 = vadd.xlane.f32.xlu0 %v254_v8 }
  0xba   : > { %v258_v10 = vsel %vm230_vm0, %v257_v9, 0.0 }
  0xc1   : > { %259 = vadd.xlane.f32.xlu0 %v258_v10 }
 0x12c   : > { %v256_v11 = vpop.xlane.xlu0 %255 }
 0x12d   : > { %v261_v12 = vmul.f32 0.03125, %v256_v11 }
 0x12f   : > { %v263_v14 = vmul.f32 %v261_v12, %v261_v12  ;;  %v266_v25 = vsub.f32 %v252_v7, %v261_v12 }
 0x134   : > { %v260_v13 = vpop.xlane.xlu0 %259 }
 0x135   : > { %v262_v15 = vmul.f32 0.03125, %v260_v13 }
 0x137   : > { %v264_v16 = vsub.f32 %v262_v15, %v263_v14 }
 0x139   : > { %v265_v17 = vmax.f32 %v264_v16, 0.0 }
 0x13b   : > { %v267_v18 = vadd.f32 1e-05, %v265_v17 }
 0x13d   : > { %584 = vrsqrt.f32 %v267_v18  ;;  %vm274_vm2 = vweird.f32 %v267_v18 }
 0x143   : > { %v585_v19 = vpop.eup %584 }
 0x144   : > { %v269_v20 = vmul.f32 %v585_v19, %v267_v18  ;;  %vm275_vm1 = vweird.f32 %v585_v19 }
 0x145   : > { %vm276_vm3 = vmor %vm274_vm2, %vm275_vm1 }
 0x146   : > { %v270_v21 = vmul.f32 %v585_v19, %v269_v20 }
 0x148   : > { %v271_v22 = vmul.f32 0.5, %v270_v21 }
 0x14a   : > { %v272_v23 = vsub.f32 1.5, %v271_v22 }
 0x14c   : > { %v273_v24 = vmul.f32 %v585_v19, %v272_v23 }
 0x14e   : > { %v277_v27 = vsel %vm276_vm3, %v585_v19, %v273_v24 }
 0x14f   : > { %v278_v29 = vmul.f32 %v277_v27, %v266_v25 }
 0x151   : > { %v279_v30 = vmul.f32 %v896_v26, %v278_v29 }
 0x153   : > { %v280_v31 = vadd.f32 %v898_v28, %v279_v30 }
 0x155   : > { %v281_v32 = vmax.f32 %v280_v31, 0.0 }
 0x157   : > { %v282_v33 = vadd.f32 %v281_v32, %v219_v4 }
 0x159   : > { %506 = vmatmul.msk.f32.vlgmr.msra.gmra.mxu1 %vm230_vm0, %v282_v33 }
 0x1d6   : > { %v303_v34 = vpop.f32.mrf.mxu1 }
 0x1d7   : > { %v304_v35 = vadd.f32 %v891_v5, %v303_v34 }
 0x1d9   : > { %v306_v36 = vsel %vm230_vm0, %v304_v35, 0.0  ;;  %v309_v37 = vmul.f32 %v304_v35, %v304_v35 }
 0x1da   : > { %307 = vadd.xlane.f32.xlu1 %v306_v36 }
 0x1db   : > { %v310_v38 = vsel %vm230_vm0, %v309_v37, 0.0 }
 0x1e2   : > { %311 = vadd.xlane.f32.xlu1 %v310_v38 }
 0x24d   : > { %v308_v39 = vpop.xlane.xlu1 %307 }
 0x24e   : > { %v313_v40 = vmul.f32 0.03125, %v308_v39 }
 0x250   : > { %v315_v42 = vmul.f32 %v313_v40, %v313_v40  ;;  %v318_v53 = vsub.f32 %v304_v35, %v313_v40 }
 0x255   : > { %v312_v41 = vpop.xlane.xlu1 %311 }
 0x256   : > { %v314_v43 = vmul.f32 0.03125, %v312_v41 }
 0x258   : > { %v316_v44 = vsub.f32 %v314_v43, %v315_v42 }
 0x25a   : > { %v317_v45 = vmax.f32 %v316_v44, 0.0 }
 0x25c   : > { %v319_v46 = vadd.f32 1e-05, %v317_v45 }
 0x25e   : > { %586 = vrsqrt.f32 %v319_v46  ;;  %vm326_vm5 = vweird.f32 %v319_v46 }
 0x264   : > { %v587_v47 = vpop.eup %586 }
 0x265   : > { %v321_v48 = vmul.f32 %v587_v47, %v319_v46  ;;  %vm327_vm4 = vweird.f32 %v587_v47 }
 0x266   : > { %vm328_vm6 = vmor %vm326_vm5, %vm327_vm4 }
 0x267   : > { %v322_v49 = vmul.f32 %v587_v47, %v321_v48 }
 0x269   : > { %v323_v50 = vmul.f32 0.5, %v322_v49 }
 0x26b   : > { %v324_v51 = vsub.f32 1.5, %v323_v50 }
 0x26d   : > { %v325_v52 = vmul.f32 %v587_v47, %v324_v51 }
 0x26f   : > { %v329_v54 = vsel %vm328_vm6, %v587_v47, %v325_v52 }
 0x270   : > { %v330_v55 = vmul.f32 %v329_v54, %v318_v53 }
 0x272   : > { %v331_v56 = vmul.f32 %v896_v26, %v330_v55 }
 0x274   : > { %v332_v57 = vadd.f32 %v898_v28, %v331_v56 }
 0x276   : > { %v333_v58 = vmax.f32 %v332_v57, 0.0 }
 0x278   : > { %v334_v59 = vadd.f32 %v333_v58, %v282_v33 }
 0x27a   : > { %507 = vmatmul.msk.f32.vlgmr.msra.gmra.mxu2 %vm230_vm0, %v334_v59 }
 0x2fd   : > { %v355_v60 = vpop.f32.mrf.mxu2 }
 0x2fe   : > { %v356_v61 = vadd.f32 %v891_v5, %v355_v60 }
 0x300   : > { %v358_v62 = vsel %vm230_vm0, %v356_v61, 0.0  ;;  %v361_v63 = vmul.f32 %v356_v61, %v356_v61 }
 0x301   : > { %359 = vadd.xlane.f32.xlu2 %v358_v62 }
 0x302   : > { %v362_v0 = vsel %vm230_vm0, %v361_v63, 0.0 }
 0x309   : > { %363 = vadd.xlane.f32.xlu2 %v362_v0 }
 0x374   : > { %v360_v1 = vpop.xlane.xlu2 %359 }
 0x375   : > { %v365_v2 = vmul.f32 0.03125, %v360_v1 }
 0x377   : > { %v367_v4 = vmul.f32 %v365_v2, %v365_v2  ;;  %v370_v15 = vsub.f32 %v356_v61, %v365_v2 }
 0x37c   : > { %v364_v3 = vpop.xlane.xlu2 %363 }
 0x37d   : > { %v366_v6 = vmul.f32 0.03125, %v364_v3 }
 0x37f   : > { %v368_v7 = vsub.f32 %v366_v6, %v367_v4 }
 0x381   : > { %v369_v8 = vmax.f32 %v368_v7, 0.0 }
 0x383   : > { %v371_v9 = vadd.f32 1e-05, %v369_v8 }
 0x385   : > { %588 = vrsqrt.f32 %v371_v9  ;;  %vm378_vm8 = vweird.f32 %v371_v9 }
 0x38b   : > { %v589_v10 = vpop.eup %588 }
 0x38c   : > { %v373_v5 = vmul.f32 %v589_v10, %v371_v9  ;;  %vm379_vm7 = vweird.f32 %v589_v10 }
 0x38d   : > { %vm380_vm9 = vmor %vm378_vm8, %vm379_vm7 }
 0x38e   : > { %v374_v11 = vmul.f32 %v589_v10, %v373_v5 }
 0x390   : > { %v375_v12 = vmul.f32 0.5, %v374_v11 }
 0x392   : > { %v376_v13 = vsub.f32 1.5, %v375_v12 }
 0x394   : > { %v377_v14 = vmul.f32 %v589_v10, %v376_v13 }
 0x396   : > { %v381_v16 = vsel %vm380_vm9, %v589_v10, %v377_v14 }
 0x397   : > { %v382_v17 = vmul.f32 %v381_v16, %v370_v15 }
 0x399   : > { %v383_v18 = vmul.f32 %v896_v26, %v382_v17 }
 0x39b   : > { %v384_v19 = vadd.f32 %v898_v28, %v383_v18 }
 0x39d   : > { %v385_v20 = vmax.f32 %v384_v19, 0.0 }
 0x39f   : > { %v386_v21 = vadd.f32 %v385_v20, %v334_v59 }
 0x3a1   : > { %387 = vst.msk [vmem:[%s218_s26] sm:$0xff] %vm230_vm0, %v386_v21 }
 0x3a2   : > { %707 = shalt.err (!%p704_p9)
}
 0x3a3   : > { %522 = dma.vmem_to_hbm [thread:$0]  (%p845_p4), %s402_s27, 128, %s404_s28, %s389_s19  }
 0x3a4 PF: > { %s415_s10 = sand.u32 1, %s738_s12   ;;  %p960_p10 = scmp.ge.s32.totalorder %s750_s15, 2 }
 0x3a5   : > { %s416_s21 = scalar_lea.sflag [#allocation4], %s415_s10 }
 0x3a6   : > { %p536_p13 = pnand %p960_p10, %p849_p6 }
 0x3a8   : > { %p537_p11 = pneg %p536_p13 }
 0x3aa   : > { %733 = dma.done.wait (%p537_p11), %s416_s21, 128  }
 0x3ab   : > { %735 = vsyncadd (%p537_p11), %s416_s21, 4294967168  ;;  %p17_p0 = scmp.ge.s32.totalorder %s819_s4, 4   ;;  %s961_s12 = smov %s742_s13 }
 0x3ac   : > { %s962_s13 = smov %s746_s14  ;;  %s963_s14 = smov %s830_s7 }
 0x3ad   : > { %s964_s15 = smov %s819_s4  ;;  %19 = sbr.rel (!%p17_p0) target bundleno = 6 (0x6), region = 85 }
 0x3b2   :  { %422 = vsyncpa [#allocation3], 1 }
 0x3b3   :  { %424 = vsyncpa [#allocation3 + $0x1], 1 }
 0x3b4   :  { %425 = vsyncpa [#allocation6], 1 }
 0x3b5   :  { %426 = vsyncpa [#allocation4], 1 }
 0x3b6   :  { %428 = vsyncpa [#allocation4 + $0x1], 1 }

</bundles_post_ra>
